<compile_context>
chip_gen: v5e
topology: v5e:2x2
jax: 0.10.0
libtpu: 0.0.40
codegen_flags: <defaults>
</compile_context>

<pallas_src>
import functools

import jax
import jax.numpy as jnp
from jax import lax
from jax.experimental import pallas as pl
from jax.experimental.pallas import tpu as pltpu


# ----------------------------------------------------------------------------- PRNG hash
def _i32(v):
    """Map a python int to its two's-complement int32 value (for constants)."""
    v &= 0xFFFFFFFF
    return v - (1 << 32) if v >= (1 << 31) else v


_FMIX1 = _i32(0x85EBCA6B)   # murmur3 fmix32 constants
_FMIX2 = _i32(0xC2B2AE35)
_GRP_SALT = _i32(0x7F4A7C15)
_LAYER_SALTS = tuple(_i32((k + 1) * 0x9E3779B9) for k in range(4))  # per-layer streams


def _srl(x, amount):
    """Logical right shift on int32 (lax requires matching shapes)."""
    return lax.shift_right_logical(x, jnp.full(x.shape, amount, x.dtype))


def _mix32(m):
    """murmur3-style finalizer; every output bit is well mixed (~Bernoulli(0.5))."""
    m = m ^ _srl(m, 16)
    m = m * jnp.int32(_FMIX1)
    m = m ^ _srl(m, 13)
    m = m * jnp.int32(_FMIX2)
    m = m ^ _srl(m, 16)
    return m


def _relu_dropout_half(z, seed, layer_salt, col0, scale=None):
    """ReLU then dropout(p=0.5) keep-mask via ONE 32-bit hash per column.

    z:     [rows, cols] float32 activations (cols = batch tile on the 128-lane axis)
    seed:  traced int32 scalar
    layer_salt: static python int (per-layer stream)
    col0:  traced int32 scalar, global batch offset of this tile (tiling-invariant mask)
    scale: if given, multiply kept activations by it (otherwise the 2x rescale is
           assumed to be folded into the next layer's weights).
    Row r of a column takes bit (r mod 32) of the column's hash, so per-element cost
    is AND + CMP + SELECT instead of a full per-element hash.
    """
    z = jnp.maximum(z, 0.0)
    rows, cols = z.shape
    n_groups = (rows + 31) // 32

    c = lax.broadcasted_iota(jnp.int32, (1, cols), 1) + col0      # global column ids
    r = lax.broadcasted_iota(jnp.int32, (rows, 1), 0)

    def col_hash(g):
        m = (seed + jnp.int32(layer_salt) + jnp.int32(_i32(g * _GRP_SALT))) \
            ^ (c * jnp.int32(_FMIX2))
        return _mix32(m)                                          # [1, cols]

    if n_groups == 1:                                             # all layers here: rows <= 32
        bit_idx = r
        m_sel = jnp.broadcast_to(col_hash(0), z.shape)
    else:                                                         # generic fallback (rows > 32)
        bit_idx = r % 32
        grp = r // 32
        m_sel = jnp.zeros(z.shape, jnp.int32)
        for g in range(n_groups):
            m_sel = jnp.where(jnp.broadcast_to(grp == g, z.shape),
                              jnp.broadcast_to(col_hash(g), z.shape), m_sel)

    row_bit = lax.shift_left(jnp.ones((rows, 1), jnp.int32), bit_idx)   # 1 << (r % 32)
    keep = (m_sel & jnp.broadcast_to(row_bit, z.shape)) != 0            # P(keep) = 0.5
    zk = z if scale is None else z * scale
    return jnp.where(keep, zk, 0.0)


# ----------------------------------------------------------------------------- kernel
def _probe_kernel(tb, seed_ref, x_ref,
                  w1_ref, b1_ref, w2_ref, b2_ref,
                  w3_ref, b3_ref, w4_ref, b4_ref,
                  o_ref):
    seed = seed_ref[0]
    col0 = pl.program_id(0) * tb        # global batch offset of this tile (lane axis)

    xb = x_ref[...]                     # [tb, n] f32, natural layout (batch on rows)

    # layer 1: contract dim 1 of both operands -> [n+2, tb]; batch lands on lanes.
    z = lax.dot_general(w1_ref[...], xb, (((1,), (1,)), ((), ())),
                        preferred_element_type=jnp.float32) + b1_ref[...]
    h = _relu_dropout_half(z, seed, _LAYER_SALTS[0], col0)   # 2x folded into w2

    # layer 2: [n+2, n+2] @ [n+2, tb]
    z = jnp.dot(w2_ref[...], h, preferred_element_type=jnp.float32) + b2_ref[...]
    h = _relu_dropout_half(z, seed, _LAYER_SALTS[1], col0)   # 2x folded into w3

    # layer 3: [n//2, n+2] @ [n+2, tb]
    z = jnp.dot(w3_ref[...], h, preferred_element_type=jnp.float32) + b3_ref[...]
    h = _relu_dropout_half(z, seed, _LAYER_SALTS[2], col0)   # 2x folded into w4

    # layer 4 (out_features == 1): M=1 dot on the (idle) MXU
    z = jnp.dot(w4_ref[...], h, preferred_element_type=jnp.float32) + b4_ref[...]
    h = _relu_dropout_half(z, seed, _LAYER_SALTS[3], col0, scale=2.0)

    o_ref[...] = h.astype(o_ref.dtype)  # lane-dense [1, tb] store


# ----------------------------------------------------------------------------- wrapper
def _round_up(x, m):
    return ((x + m - 1) // m) * m


def _padded_vmem_bytes(shape, itemsize=4):
    r, c = shape
    return _round_up(r, 8) * _round_up(c, 128) * itemsize


@functools.partial(jax.jit, static_argnames=("block_b",))
def stalin3000_anal_probe(x, w1, b1, w2, b2, w3, b3, w4, b4, seed, *, block_b=32768):
    """Forward pass of Stalin3000_anal_probe.

    x: [B, n] float32. Weights in PyTorch layout (w: [out, in], b: [out]).
    Returns [B, 1] float32.
    """
    B, n = x.shape
    h1, h2, h3 = w1.shape[0], w2.shape[0], w3.shape[0]

    # ---- per-batch-column VMEM footprint (f32, lane/sublane padded) -> tile cap
    xlanes = _round_up(n, 128)                       # x block pads its lane dim to 128
    act_rows = _round_up(h1, 8) + _round_up(h2, 8) + _round_up(h3, 8) + 8
    per_col_bytes = 2 * xlanes * 4 + 2 * 8 * 4 + 6 * act_rows * 4

    try:
        vmem_cap = int(pltpu.get_tpu_info().vmem_capacity_bytes)
    except Exception:
        vmem_cap = 64 * 2**20                        # conservative: v7x has 64 MiB / TC
    data_budget = max(16 * 2**20, int(0.62 * vmem_cap) - 8 * 2**20)
    limit_cap = max(24 * 2**20, int(0.80 * vmem_cap))   # leave Mosaic scratch headroom

    # ---- batch tiling: batch lives on the 128-lane axis inside the kernel
    bp128 = _round_up(max(B, 1), 128)
    tb = _round_up(min(block_b, bp128), 128)
    tb = min(tb, max(128, (data_budget // per_col_bytes) // 128 * 128))
    steps = max(1, -(-bp128 // tb))
    if steps == 1 and bp128 > 128:
        steps = 2                                    # v7x: 2 TensorCores -> keep both busy
    tb = _round_up(-(-bp128 // steps), 128)
    bp = steps * tb
    grid = (steps,)

    x_in = x.astype(jnp.float32)
    if bp != B:
        x_in = jnp.pad(x_in, ((0, bp - B), (0, 0)))  # only pass over x, and only if needed

    # weights stay f32; fold the dropout 2x rescale of layers 1-3 into the next weights
    w1c = w1.astype(jnp.float32)                     # [n+2, n]
    w2c = (w2 * 2.0).astype(jnp.float32)             # [n+2, n+2]
    w3c = (w3 * 2.0).astype(jnp.float32)             # [n//2, n+2]
    w4c = (w4 * 2.0).astype(jnp.float32)             # [1, n//2]
    b1c = b1.reshape(-1, 1).astype(jnp.float32)      # [n+2, 1]
    b2c = b2.reshape(-1, 1).astype(jnp.float32)
    b3c = b3.reshape(-1, 1).astype(jnp.float32)
    b4c = b4.reshape(1, 1).astype(jnp.float32)

    seed_arr = jnp.reshape(jnp.asarray(seed, jnp.int32), (1,))

    def x_map(i, seed_ref):       # batch-tiled input (rows)
        return (i, 0)

    def o_map(i, seed_ref):       # batch-tiled output (lanes)
        return (0, i)

    def p_map(i, seed_ref):       # parameters: resident in VMEM across all grid steps
        return (0, 0)

    grid_spec = pltpu.PrefetchScalarGridSpec(
        num_scalar_prefetch=1,                       # seed lands in SMEM, zero extra DMA
        grid=grid,
        in_specs=[
            pl.BlockSpec((tb, n), x_map),
            pl.BlockSpec(w1c.shape, p_map), pl.BlockSpec(b1c.shape, p_map),
            pl.BlockSpec(w2c.shape, p_map), pl.BlockSpec(b2c.shape, p_map),
            pl.BlockSpec(w3c.shape, p_map), pl.BlockSpec(b3c.shape, p_map),
            pl.BlockSpec(w4c.shape, p_map), pl.BlockSpec(b4c.shape, p_map),
        ],
        out_specs=pl.BlockSpec((1, tb), o_map),
    )

    # ---- advisory cost estimate for XLA's scheduler
    params = (w1c, b1c, w2c, b2c, w3c, b3c, w4c, b4c)
    flops = 2 * bp * (n * h1 + h1 * h2 + h2 * h3 + h3 * 1)
    param_raw_bytes = sum(int(a.size) * 4 for a in params)
    bytes_accessed = int(x_in.size) * 4 + bp * 4 + param_raw_bytes
    cost = pl.CostEstimate(flops=int(flops), transcendentals=0,
                           bytes_accessed=int(bytes_accessed))

    # ---- explicit VMEM budget from the actual (padded) tile footprint
    param_alloc = 2 * sum(_padded_vmem_bytes(a.shape) for a in params)
    vmem_limit = int(min(limit_cap,
                         max(16 * 2**20,
                             per_col_bytes * tb + param_alloc + 6 * 2**20)))

    outT = pl.pallas_call(
        functools.partial(_probe_kernel, tb),
        out_shape=jax.ShapeDtypeStruct((1, bp), jnp.float32),
        grid_spec=grid_spec,
        compiler_params=pltpu.CompilerParams(
            dimension_semantics=("parallel",),       # shard batch tiles across cores
            vmem_limit_bytes=vmem_limit,
        ),
        cost_estimate=cost,
    )(seed_arr, x_in, w1c, b1c, w2c, b2c, w3c, b3c, w4c, b4c)

    return jnp.transpose(outT[:, :B])                # [B, 1]


# ----------------------------------------------------------------------------- demo
def _init_linear(key, fan_in, fan_out):
    """PyTorch nn.Linear default init; returns w [out, in], b [out]."""
    kw, kb = jax.random.split(key)
    bound = 1.0 / (fan_in ** 0.5)
    w = jax.random.uniform(kw, (fan_out, fan_in), jnp.float32, -bound, bound)
    b = jax.random.uniform(kb, (fan_out,), jnp.float32, -bound, bound)
    return w, b


if __name__ == "__main__":
    n = 16          # module hyper-parameter (feature dim)
    batch = 8

    root = jax.random.PRNGKey(0)
    kx, k1, k2, k3, k4 = jax.random.split(root, 5)

    # Layer shapes implied by __init__:
    #   insider : n      -> n + 2
    #   hl1     : n + 2  -> n + 2
    #   hl2     : n + 2  -> n // 2
    #   outsider: n // 2 -> 1
    w1, b1 = _init_linear(k1, n, n + 2)
    w2, b2 = _init_linear(k2, n + 2, n + 2)
    w3, b3 = _init_linear(k3, n + 2, n // 2)
    w4, b4 = _init_linear(k4, n // 2, 1)

    x = jax.random.normal(kx, (batch, n), jnp.float32)
    seed = jnp.int32(1234)

    out = stalin3000_anal_probe(x, w1, b1, w2, b2, w3, b3, w4, b4, seed)
    out = jax.block_until_ready(out)

    assert out.shape == (batch, 1) and out.dtype == jnp.float32
    assert bool(jnp.all(jnp.isfinite(out)))
    print("KERNEL_OK")
</pallas_src>

<mosaic_0001>
module attributes {stable_mosaic.version = 11 : i64} {
  func.func @_probe_kernel(%arg0: i32, %arg1: memref<1xi32, #tpu.memory_space<smem>>, %arg2: memref<128x16xf32, #tpu.memory_space<vmem>>, %arg3: memref<18x16xf32, #tpu.memory_space<vmem>>, %arg4: memref<18x1xf32, #tpu.memory_space<vmem>>, %arg5: memref<18x18xf32, #tpu.memory_space<vmem>>, %arg6: memref<18x1xf32, #tpu.memory_space<vmem>>, %arg7: memref<8x18xf32, #tpu.memory_space<vmem>>, %arg8: memref<8x1xf32, #tpu.memory_space<vmem>>, %arg9: memref<1x8xf32, #tpu.memory_space<vmem>>, %arg10: memref<1x1xf32, #tpu.memory_space<vmem>>, %arg11: memref<1x128xf32, #tpu.memory_space<vmem>>) attributes {dimension_semantics = [#tpu.dimension_semantics<parallel>], iteration_bounds = array<i64: 1>, scalar_prefetch = 1 : i64, scratch_operands = 0 : i64, tpu.core_type = #tpu.core_type<tc>, window_params = [{transform_indices = @transform_0, window_bounds = array<i64: 128, 16>}, {pipeline_mode = #tpu.pipeline_mode<synchronous>, transform_indices = @transform_1, window_bounds = array<i64: 18, 16>}, {pipeline_mode = #tpu.pipeline_mode<synchronous>, transform_indices = @transform_2, window_bounds = array<i64: 18, 1>}, {pipeline_mode = #tpu.pipeline_mode<synchronous>, transform_indices = @transform_3, window_bounds = array<i64: 18, 18>}, {pipeline_mode = #tpu.pipeline_mode<synchronous>, transform_indices = @transform_4, window_bounds = array<i64: 18, 1>}, {pipeline_mode = #tpu.pipeline_mode<synchronous>, transform_indices = @transform_5, window_bounds = array<i64: 8, 18>}, {pipeline_mode = #tpu.pipeline_mode<synchronous>, transform_indices = @transform_6, window_bounds = array<i64: 8, 1>}, {pipeline_mode = #tpu.pipeline_mode<synchronous>, transform_indices = @transform_7, window_bounds = array<i64: 1, 8>}, {pipeline_mode = #tpu.pipeline_mode<synchronous>, transform_indices = @transform_8, window_bounds = array<i64: 1, 1>}, {transform_indices = @transform_9, window_bounds = array<i64: 1, 128>}]} {
    %c0 = arith.constant 0 : index
    %0 = memref.load %arg1[%c0] : memref<1xi32, #tpu.memory_space<smem>>
    %c128_i32 = arith.constant 128 : i32
    %1 = arith.muli %arg0, %c128_i32 : i32
    %c0_0 = arith.constant 0 : index
    %c0_1 = arith.constant 0 : index
    %2 = vector.load %arg2[%c0_0, %c0_1] : memref<128x16xf32, #tpu.memory_space<vmem>>, vector<128x16xf32>
    %c0_2 = arith.constant 0 : index
    %c0_3 = arith.constant 0 : index
    %3 = vector.load %arg3[%c0_2, %c0_3] : memref<18x16xf32, #tpu.memory_space<vmem>>, vector<18x16xf32>
    %cst = arith.constant dense<0.000000e+00> : vector<18x128xf32>
    %4 = tpu.matmul %3, %2, %cst {dimension_numbers = #tpu.dot_dimension_numbers<[1], [1], [0], [0], [0, 0, 1, 0], [], []>} : vector<18x16xf32>, vector<128x16xf32>, vector<18x128xf32> -> vector<18x128xf32>
    %c0_4 = arith.constant 0 : index
    %c0_5 = arith.constant 0 : index
    %5 = vector.load %arg4[%c0_4, %c0_5] : memref<18x1xf32, #tpu.memory_space<vmem>>, vector<18x1xf32>
    %6 = vector.broadcast %5 : vector<18x1xf32> to vector<18x128xf32>
    %7 = arith.addf %4, %6 : vector<18x128xf32>
    %cst_6 = arith.constant 0.000000e+00 : f32
    %8 = vector.broadcast %cst_6 : f32 to vector<18x128xf32>
    %9 = arith.maximumf %7, %8 : vector<18x128xf32>
    %10 = tpu.iota {dimensions = array<i32: 1>} : vector<1x128xi32>
    %11 = vector.broadcast %1 : i32 to vector<1x128xi32>
    %12 = arith.addi %10, %11 : vector<1x128xi32>
    %13 = tpu.iota {dimensions = array<i32: 0>} : vector<18x1xi32>
    %c-1640531527_i32 = arith.constant -1640531527 : i32
    %14 = arith.addi %0, %c-1640531527_i32 : i32
    %c0_i32 = arith.constant 0 : i32
    %15 = arith.addi %14, %c0_i32 : i32
    %c-1028477387_i32 = arith.constant -1028477387 : i32
    %16 = vector.broadcast %c-1028477387_i32 : i32 to vector<1x128xi32>
    %17 = arith.muli %12, %16 : vector<1x128xi32>
    %18 = vector.broadcast %15 : i32 to vector<1x128xi32>
    %19 = arith.xori %18, %17 : vector<1x128xi32>
    %c16_i32 = arith.constant 16 : i32
    %20 = vector.broadcast %c16_i32 : i32 to vector<1x128xi32>
    %21 = arith.shrui %19, %20 : vector<1x128xi32>
    %22 = arith.xori %19, %21 : vector<1x128xi32>
    %c-2048144789_i32 = arith.constant -2048144789 : i32
    %23 = vector.broadcast %c-2048144789_i32 : i32 to vector<1x128xi32>
    %24 = arith.muli %22, %23 : vector<1x128xi32>
    %c13_i32 = arith.constant 13 : i32
    %25 = vector.broadcast %c13_i32 : i32 to vector<1x128xi32>
    %26 = arith.shrui %24, %25 : vector<1x128xi32>
    %27 = arith.xori %24, %26 : vector<1x128xi32>
    %c-1028477387_i32_7 = arith.constant -1028477387 : i32
    %28 = vector.broadcast %c-1028477387_i32_7 : i32 to vector<1x128xi32>
    %29 = arith.muli %27, %28 : vector<1x128xi32>
    %c16_i32_8 = arith.constant 16 : i32
    %30 = vector.broadcast %c16_i32_8 : i32 to vector<1x128xi32>
    %31 = arith.shrui %29, %30 : vector<1x128xi32>
    %32 = arith.xori %29, %31 : vector<1x128xi32>
    %33 = vector.shape_cast %32 : vector<1x128xi32> to vector<1x128xi32>
    %34 = vector.broadcast %33 : vector<1x128xi32> to vector<18x128xi32>
    %c1_i32 = arith.constant 1 : i32
    %35 = vector.broadcast %c1_i32 : i32 to vector<18x1xi32>
    %36 = arith.shli %35, %13 : vector<18x1xi32>
    %37 = vector.shape_cast %36 : vector<18x1xi32> to vector<18x1xi32>
    %38 = vector.broadcast %37 : vector<18x1xi32> to vector<18x128xi32>
    %39 = arith.andi %34, %38 : vector<18x128xi32>
    %c0_i32_9 = arith.constant 0 : i32
    %40 = vector.broadcast %c0_i32_9 : i32 to vector<18x128xi32>
    %41 = arith.cmpi ne, %39, %40 : vector<18x128xi32>
    %cst_10 = arith.constant 0.000000e+00 : f32
    %42 = vector.broadcast %cst_10 : f32 to vector<18x128xf32>
    %43 = arith.select %41, %9, %42 : vector<18x128xi1>, vector<18x128xf32>
    %c0_11 = arith.constant 0 : index
    %c0_12 = arith.constant 0 : index
    %44 = vector.load %arg5[%c0_11, %c0_12] : memref<18x18xf32, #tpu.memory_space<vmem>>, vector<18x18xf32>
    %cst_13 = arith.constant dense<0.000000e+00> : vector<18x128xf32>
    %45 = tpu.matmul %44, %43, %cst_13 {dimension_numbers = #tpu.dot_dimension_numbers<[1], [0], [0], [1], [0, 0, 1, 1], [], []>} : vector<18x18xf32>, vector<18x128xf32>, vector<18x128xf32> -> vector<18x128xf32>
    %c0_14 = arith.constant 0 : index
    %c0_15 = arith.constant 0 : index
    %46 = vector.load %arg6[%c0_14, %c0_15] : memref<18x1xf32, #tpu.memory_space<vmem>>, vector<18x1xf32>
    %47 = vector.broadcast %46 : vector<18x1xf32> to vector<18x128xf32>
    %48 = arith.addf %45, %47 : vector<18x128xf32>
    %cst_16 = arith.constant 0.000000e+00 : f32
    %49 = vector.broadcast %cst_16 : f32 to vector<18x128xf32>
    %50 = arith.maximumf %48, %49 : vector<18x128xf32>
    %51 = tpu.iota {dimensions = array<i32: 1>} : vector<1x128xi32>
    %52 = vector.broadcast %1 : i32 to vector<1x128xi32>
    %53 = arith.addi %51, %52 : vector<1x128xi32>
    %54 = tpu.iota {dimensions = array<i32: 0>} : vector<18x1xi32>
    %c1013904242_i32 = arith.constant 1013904242 : i32
    %55 = arith.addi %0, %c1013904242_i32 : i32
    %c0_i32_17 = arith.constant 0 : i32
    %56 = arith.addi %55, %c0_i32_17 : i32
    %c-1028477387_i32_18 = arith.constant -1028477387 : i32
    %57 = vector.broadcast %c-1028477387_i32_18 : i32 to vector<1x128xi32>
    %58 = arith.muli %53, %57 : vector<1x128xi32>
    %59 = vector.broadcast %56 : i32 to vector<1x128xi32>
    %60 = arith.xori %59, %58 : vector<1x128xi32>
    %c16_i32_19 = arith.constant 16 : i32
    %61 = vector.broadcast %c16_i32_19 : i32 to vector<1x128xi32>
    %62 = arith.shrui %60, %61 : vector<1x128xi32>
    %63 = arith.xori %60, %62 : vector<1x128xi32>
    %c-2048144789_i32_20 = arith.constant -2048144789 : i32
    %64 = vector.broadcast %c-2048144789_i32_20 : i32 to vector<1x128xi32>
    %65 = arith.muli %63, %64 : vector<1x128xi32>
    %c13_i32_21 = arith.constant 13 : i32
    %66 = vector.broadcast %c13_i32_21 : i32 to vector<1x128xi32>
    %67 = arith.shrui %65, %66 : vector<1x128xi32>
    %68 = arith.xori %65, %67 : vector<1x128xi32>
    %c-1028477387_i32_22 = arith.constant -1028477387 : i32
    %69 = vector.broadcast %c-1028477387_i32_22 : i32 to vector<1x128xi32>
    %70 = arith.muli %68, %69 : vector<1x128xi32>
    %c16_i32_23 = arith.constant 16 : i32
    %71 = vector.broadcast %c16_i32_23 : i32 to vector<1x128xi32>
    %72 = arith.shrui %70, %71 : vector<1x128xi32>
    %73 = arith.xori %70, %72 : vector<1x128xi32>
    %74 = vector.shape_cast %73 : vector<1x128xi32> to vector<1x128xi32>
    %75 = vector.broadcast %74 : vector<1x128xi32> to vector<18x128xi32>
    %c1_i32_24 = arith.constant 1 : i32
    %76 = vector.broadcast %c1_i32_24 : i32 to vector<18x1xi32>
    %77 = arith.shli %76, %54 : vector<18x1xi32>
    %78 = vector.shape_cast %77 : vector<18x1xi32> to vector<18x1xi32>
    %79 = vector.broadcast %78 : vector<18x1xi32> to vector<18x128xi32>
    %80 = arith.andi %75, %79 : vector<18x128xi32>
    %c0_i32_25 = arith.constant 0 : i32
    %81 = vector.broadcast %c0_i32_25 : i32 to vector<18x128xi32>
    %82 = arith.cmpi ne, %80, %81 : vector<18x128xi32>
    %cst_26 = arith.constant 0.000000e+00 : f32
    %83 = vector.broadcast %cst_26 : f32 to vector<18x128xf32>
    %84 = arith.select %82, %50, %83 : vector<18x128xi1>, vector<18x128xf32>
    %c0_27 = arith.constant 0 : index
    %c0_28 = arith.constant 0 : index
    %85 = vector.load %arg7[%c0_27, %c0_28] : memref<8x18xf32, #tpu.memory_space<vmem>>, vector<8x18xf32>
    %cst_29 = arith.constant dense<0.000000e+00> : vector<8x128xf32>
    %86 = tpu.matmul %85, %84, %cst_29 {dimension_numbers = #tpu.dot_dimension_numbers<[1], [0], [0], [1], [0, 0, 1, 1], [], []>} : vector<8x18xf32>, vector<18x128xf32>, vector<8x128xf32> -> vector<8x128xf32>
    %c0_30 = arith.constant 0 : index
    %c0_31 = arith.constant 0 : index
    %87 = vector.load %arg8[%c0_30, %c0_31] : memref<8x1xf32, #tpu.memory_space<vmem>>, vector<8x1xf32>
    %88 = vector.broadcast %87 : vector<8x1xf32> to vector<8x128xf32>
    %89 = arith.addf %86, %88 : vector<8x128xf32>
    %cst_32 = arith.constant 0.000000e+00 : f32
    %90 = vector.broadcast %cst_32 : f32 to vector<8x128xf32>
    %91 = arith.maximumf %89, %90 : vector<8x128xf32>
    %92 = tpu.iota {dimensions = array<i32: 1>} : vector<1x128xi32>
    %93 = vector.broadcast %1 : i32 to vector<1x128xi32>
    %94 = arith.addi %92, %93 : vector<1x128xi32>
    %95 = tpu.iota {dimensions = array<i32: 0>} : vector<8x1xi32>
    %c-626627285_i32 = arith.constant -626627285 : i32
    %96 = arith.addi %0, %c-626627285_i32 : i32
    %c0_i32_33 = arith.constant 0 : i32
    %97 = arith.addi %96, %c0_i32_33 : i32
    %c-1028477387_i32_34 = arith.constant -1028477387 : i32
    %98 = vector.broadcast %c-1028477387_i32_34 : i32 to vector<1x128xi32>
    %99 = arith.muli %94, %98 : vector<1x128xi32>
    %100 = vector.broadcast %97 : i32 to vector<1x128xi32>
    %101 = arith.xori %100, %99 : vector<1x128xi32>
    %c16_i32_35 = arith.constant 16 : i32
    %102 = vector.broadcast %c16_i32_35 : i32 to vector<1x128xi32>
    %103 = arith.shrui %101, %102 : vector<1x128xi32>
    %104 = arith.xori %101, %103 : vector<1x128xi32>
    %c-2048144789_i32_36 = arith.constant -2048144789 : i32
    %105 = vector.broadcast %c-2048144789_i32_36 : i32 to vector<1x128xi32>
    %106 = arith.muli %104, %105 : vector<1x128xi32>
    %c13_i32_37 = arith.constant 13 : i32
    %107 = vector.broadcast %c13_i32_37 : i32 to vector<1x128xi32>
    %108 = arith.shrui %106, %107 : vector<1x128xi32>
    %109 = arith.xori %106, %108 : vector<1x128xi32>
    %c-1028477387_i32_38 = arith.constant -1028477387 : i32
    %110 = vector.broadcast %c-1028477387_i32_38 : i32 to vector<1x128xi32>
    %111 = arith.muli %109, %110 : vector<1x128xi32>
    %c16_i32_39 = arith.constant 16 : i32
    %112 = vector.broadcast %c16_i32_39 : i32 to vector<1x128xi32>
    %113 = arith.shrui %111, %112 : vector<1x128xi32>
    %114 = arith.xori %111, %113 : vector<1x128xi32>
    %115 = vector.shape_cast %114 : vector<1x128xi32> to vector<1x128xi32>
    %116 = vector.broadcast %115 : vector<1x128xi32> to vector<8x128xi32>
    %c1_i32_40 = arith.constant 1 : i32
    %117 = vector.broadcast %c1_i32_40 : i32 to vector<8x1xi32>
    %118 = arith.shli %117, %95 : vector<8x1xi32>
    %119 = vector.shape_cast %118 : vector<8x1xi32> to vector<8x1xi32>
    %120 = vector.broadcast %119 : vector<8x1xi32> to vector<8x128xi32>
    %121 = arith.andi %116, %120 : vector<8x128xi32>
    %c0_i32_41 = arith.constant 0 : i32
    %122 = vector.broadcast %c0_i32_41 : i32 to vector<8x128xi32>
    %123 = arith.cmpi ne, %121, %122 : vector<8x128xi32>
    %cst_42 = arith.constant 0.000000e+00 : f32
    %124 = vector.broadcast %cst_42 : f32 to vector<8x128xf32>
    %125 = arith.select %123, %91, %124 : vector<8x128xi1>, vector<8x128xf32>
    %c0_43 = arith.constant 0 : index
    %c0_44 = arith.constant 0 : index
    %126 = vector.load %arg9[%c0_43, %c0_44] : memref<1x8xf32, #tpu.memory_space<vmem>>, vector<1x8xf32>
    %cst_45 = arith.constant dense<0.000000e+00> : vector<1x128xf32>
    %127 = tpu.matmul %126, %125, %cst_45 {dimension_numbers = #tpu.dot_dimension_numbers<[1], [0], [0], [1], [0, 0, 1, 1], [], []>} : vector<1x8xf32>, vector<8x128xf32>, vector<1x128xf32> -> vector<1x128xf32>
    %c0_46 = arith.constant 0 : index
    %c0_47 = arith.constant 0 : index
    %128 = vector.load %arg10[%c0_46, %c0_47] : memref<1x1xf32, #tpu.memory_space<vmem>>, vector<1x1xf32>
    %129 = vector.broadcast %128 : vector<1x1xf32> to vector<1x128xf32>
    %130 = arith.addf %127, %129 : vector<1x128xf32>
    %cst_48 = arith.constant 0.000000e+00 : f32
    %131 = vector.broadcast %cst_48 : f32 to vector<1x128xf32>
    %132 = arith.maximumf %130, %131 : vector<1x128xf32>
    %133 = tpu.iota {dimensions = array<i32: 1>} : vector<1x128xi32>
    %134 = vector.broadcast %1 : i32 to vector<1x128xi32>
    %135 = arith.addi %133, %134 : vector<1x128xi32>
    %136 = tpu.iota {dimensions = array<i32: 0>} : vector<1x1xi32>
    %c2027808484_i32 = arith.constant 2027808484 : i32
    %137 = arith.addi %0, %c2027808484_i32 : i32
    %c0_i32_49 = arith.constant 0 : i32
    %138 = arith.addi %137, %c0_i32_49 : i32
    %c-1028477387_i32_50 = arith.constant -1028477387 : i32
    %139 = vector.broadcast %c-1028477387_i32_50 : i32 to vector<1x128xi32>
    %140 = arith.muli %135, %139 : vector<1x128xi32>
    %141 = vector.broadcast %138 : i32 to vector<1x128xi32>
    %142 = arith.xori %141, %140 : vector<1x128xi32>
    %c16_i32_51 = arith.constant 16 : i32
    %143 = vector.broadcast %c16_i32_51 : i32 to vector<1x128xi32>
    %144 = arith.shrui %142, %143 : vector<1x128xi32>
    %145 = arith.xori %142, %144 : vector<1x128xi32>
    %c-2048144789_i32_52 = arith.constant -2048144789 : i32
    %146 = vector.broadcast %c-2048144789_i32_52 : i32 to vector<1x128xi32>
    %147 = arith.muli %145, %146 : vector<1x128xi32>
    %c13_i32_53 = arith.constant 13 : i32
    %148 = vector.broadcast %c13_i32_53 : i32 to vector<1x128xi32>
    %149 = arith.shrui %147, %148 : vector<1x128xi32>
    %150 = arith.xori %147, %149 : vector<1x128xi32>
    %c-1028477387_i32_54 = arith.constant -1028477387 : i32
    %151 = vector.broadcast %c-1028477387_i32_54 : i32 to vector<1x128xi32>
    %152 = arith.muli %150, %151 : vector<1x128xi32>
    %c16_i32_55 = arith.constant 16 : i32
    %153 = vector.broadcast %c16_i32_55 : i32 to vector<1x128xi32>
    %154 = arith.shrui %152, %153 : vector<1x128xi32>
    %155 = arith.xori %152, %154 : vector<1x128xi32>
    %c1_i32_56 = arith.constant 1 : i32
    %156 = vector.broadcast %c1_i32_56 : i32 to vector<1x1xi32>
    %157 = arith.shli %156, %136 : vector<1x1xi32>
    %158 = vector.shape_cast %157 : vector<1x1xi32> to vector<1x1xi32>
    %159 = vector.broadcast %158 : vector<1x1xi32> to vector<1x128xi32>
    %160 = arith.andi %155, %159 : vector<1x128xi32>
    %c0_i32_57 = arith.constant 0 : i32
    %161 = vector.broadcast %c0_i32_57 : i32 to vector<1x128xi32>
    %162 = arith.cmpi ne, %160, %161 : vector<1x128xi32>
    %cst_58 = arith.constant 2.000000e+00 : f32
    %163 = vector.broadcast %cst_58 : f32 to vector<1x128xf32>
    %164 = arith.mulf %132, %163 : vector<1x128xf32>
    %cst_59 = arith.constant 0.000000e+00 : f32
    %165 = vector.broadcast %cst_59 : f32 to vector<1x128xf32>
    %166 = arith.select %162, %164, %165 : vector<1x128xi1>, vector<1x128xf32>
    %c0_60 = arith.constant 0 : index
    %c0_61 = arith.constant 0 : index
    %167 = vector.load %arg11[%c0_60, %c0_61] : memref<1x128xf32, #tpu.memory_space<vmem>>, vector<1x128xf32>
    tpu.vector_store %arg11[%c0_60, %c0_61], %166 {strides = array<i32>} : memref<1x128xf32, #tpu.memory_space<vmem>>, vector<1x128xf32>,
    return
  }
  func.func @transform_0(%arg0: i32, %arg1: memref<1xi32, #tpu.memory_space<smem>>) -> (i32, i32) {
    %c0_i32 = arith.constant 0 : i32
    %c0_i32_0 = arith.constant 0 : i32
    return %arg0, %c0_i32 : i32, i32
  }
  func.func @transform_1(%arg0: i32, %arg1: memref<1xi32, #tpu.memory_space<smem>>) -> (i32, i32) {
    %c0_i32 = arith.constant 0 : i32
    %c0_i32_0 = arith.constant 0 : i32
    %c0_i32_1 = arith.constant 0 : i32
    return %c0_i32, %c0_i32_0 : i32, i32
  }
  func.func @transform_2(%arg0: i32, %arg1: memref<1xi32, #tpu.memory_space<smem>>) -> (i32, i32) {
    %c0_i32 = arith.constant 0 : i32
    %c0_i32_0 = arith.constant 0 : i32
    %c0_i32_1 = arith.constant 0 : i32
    return %c0_i32, %c0_i32_0 : i32, i32
  }
  func.func @transform_3(%arg0: i32, %arg1: memref<1xi32, #tpu.memory_space<smem>>) -> (i32, i32) {
    %c0_i32 = arith.constant 0 : i32
    %c0_i32_0 = arith.constant 0 : i32
    %c0_i32_1 = arith.constant 0 : i32
    return %c0_i32, %c0_i32_0 : i32, i32
  }
  func.func @transform_4(%arg0: i32, %arg1: memref<1xi32, #tpu.memory_space<smem>>) -> (i32, i32) {
    %c0_i32 = arith.constant 0 : i32
    %c0_i32_0 = arith.constant 0 : i32
    %c0_i32_1 = arith.constant 0 : i32
    return %c0_i32, %c0_i32_0 : i32, i32
  }
  func.func @transform_5(%arg0: i32, %arg1: memref<1xi32, #tpu.memory_space<smem>>) -> (i32, i32) {
    %c0_i32 = arith.constant 0 : i32
    %c0_i32_0 = arith.constant 0 : i32
    %c0_i32_1 = arith.constant 0 : i32
    return %c0_i32, %c0_i32_0 : i32, i32
  }
  func.func @transform_6(%arg0: i32, %arg1: memref<1xi32, #tpu.memory_space<smem>>) -> (i32, i32) {
    %c0_i32 = arith.constant 0 : i32
    %c0_i32_0 = arith.constant 0 : i32
    %c0_i32_1 = arith.constant 0 : i32
    return %c0_i32, %c0_i32_0 : i32, i32
  }
  func.func @transform_7(%arg0: i32, %arg1: memref<1xi32, #tpu.memory_space<smem>>) -> (i32, i32) {
    %c0_i32 = arith.constant 0 : i32
    %c0_i32_0 = arith.constant 0 : i32
    %c0_i32_1 = arith.constant 0 : i32
    return %c0_i32, %c0_i32_0 : i32, i32
  }
  func.func @transform_8(%arg0: i32, %arg1: memref<1xi32, #tpu.memory_space<smem>>) -> (i32, i32) {
    %c0_i32 = arith.constant 0 : i32
    %c0_i32_0 = arith.constant 0 : i32
    %c0_i32_1 = arith.constant 0 : i32
    return %c0_i32, %c0_i32_0 : i32, i32
  }
  func.func @transform_9(%arg0: i32, %arg1: memref<1xi32, #tpu.memory_space<smem>>) -> (i32, i32) {
    %c0_i32 = arith.constant 0 : i32
    %c0_i32_0 = arith.constant 0 : i32
    return %c0_i32, %arg0 : i32, i32
  }
}

</mosaic_0001>

<bundles_post_ra>
// kernel: stalin3000_anal_probe.1
= control target key start
LH: loop header
LB: loop body
LE: loop exit
PB: predicated region body
PF: predicated region fallthrough
CT: control target
= control target key end

     0   :  { %vm75_vm0 = vcmask 130048   ;;  %v415_v10 = vmov 0   ;;  %v162_v27 = vlaneseq  ;;  %v416_v46 = vmov 1   ;;  %s620_s1 = inlined_call_operand.vmem [shape: f32[128,16], index: 1, kind: input, shape index: {}]   ;;  %s621_s3 = inlined_call_operand.vmem [shape: f32[18,1], index: 3, kind: input, shape index: {}]   ;;  %s622_s7 = inlined_call_operand.vmem [shape: f32[8,1], index: 7, kind: input, shape index: {}]   ;;  %s623_s5 = inlined_call_operand.vmem [shape: f32[18,1], index: 5, kind: input, shape index: {}]   ;;  %s624_s9 = inlined_call_operand.<no memory space> [shape: f32[1,1], index: 9, kind: input, shape index: {}]   ;;  %s625_s2 = inlined_call_operand.vmem [shape: f32[18,16], index: 2, kind: input, shape index: {}]   ;;  %s626_s0 = inlined_call_operand.<no memory space> [shape: s32[1], index: 0, kind: input, shape index: {}]   ;;  %s627_s4 = inlined_call_operand.vmem [shape: f32[18,18], index: 4, kind: input, shape index: {}]   ;;  %s628_s6 = inlined_call_operand.vmem [shape: f32[8,18], index: 6, kind: input, shape index: {}]   ;;  %s629_s8 = inlined_call_operand.vmem [shape: f32[1,8], index: 8, kind: input, shape index: {}]   ;;  %s630_s10 = inlined_call_operand.vmem [shape: f32[1,128], index: 10, kind: output, shape index: {}]  }
   0x1   :  { %v53_v0 = vld [vmem:[%s620_s1 + $0x78] sm:$0xff]  ;;  %v52_v1 = vld [vmem:[%s620_s1 + $0x70] sm:$0xff]  ;;  %v51_v2 = vld [vmem:[%s620_s1 + $0x68] sm:$0xff]  ;;  %412 = vset.pattern.permute.xlu0 %v415_v10  ;;  %413 = vset.pattern.permute.xlu1 %v415_v10  ;;  %v16_v19 = vstv %s624_s9  ;;  %s170_s21 = sadd.s32 2654435769, %s626_s0  ;;  %vm225_vm2 = vcmask 1041408  }
   0x2   :  { %379 = vmatpush.xpose.msk.msra.mxu0 %vm75_vm0, %v53_v0  ;;  %v50_v3 = vld [vmem:[%s620_s1 + $0x60] sm:$0xff]  ;;  %v49_v4 = vld [vmem:[%s620_s1 + $0x58] sm:$0xff]  ;;  %v48_v5 = vld [vmem:[%s620_s1 + $0x50] sm:$0xff]  ;;  %414 = vset.pattern.permute.xlu2 %v415_v10  ;;  %17 = vst [vmem:[#allocation4] sm:$0x1] %v16_v19  ;;  %v163_v28 = vand.u32 127, %v162_v27  ;;  %v172_v30 = vstv %s170_s21 }
   0x3   :  { %v47_v6 = vld [vmem:[%s620_s1 + $0x48] sm:$0xff]  ;;  %v46_v7 = vld [vmem:[%s620_s1 + $0x40] sm:$0xff]  ;;  %v45_v8 = vld [vmem:[%s620_s1 + $0x38] sm:$0xff]  ;;  %v167_v38 = vshrl.u32 %v162_v27, 7  ;;  %vm215_vm5 = vcmask 146432   ;;  %vm334_vm10 = vcmask 64512  }
   0x4   :  { %v59_v9 = vld [vmem:[%s621_s3 + $0x10] sm:$0x3]  ;;  %v43_v12 = vld [vmem:[%s620_s1 + $0x28] sm:$0xff]  ;;  %v57_v13 = vld [vmem:[%s621_s3] sm:$0xff]  ;;  %v569_v29 = vmul.u32 3266489909, %v163_v28 }
   0x5   :  { %v44_v11 = vld [vmem:[%s620_s1 + $0x30] sm:$0xff]  ;;  %72 = vperm.xlu0 %412, %v59_v9   ;;  %v58_v14 = vld [vmem:[%s621_s3 + $0x8] sm:$0xff]  ;;  %62 = vperm.xlu1 %413, %v57_v13   ;;  %v42_v15 = vld [vmem:[%s620_s1 + $0x20] sm:$0xff]  ;;  %v169_v40 = vadd.s32 16, %v167_v38  ;;  %v168_v44 = vadd.s32 8, %v167_v38  ;;  %v575_v51 = vshll.u32 %v416_v46, %v167_v38 }
   0x6   :  { %380 = vmatpush.xpose.msk.msra.mxu0 %vm75_vm0, %v52_v1  ;;  %v41_v16 = vld [vmem:[%s620_s1 + $0x18] sm:$0xff]  ;;  %v279_v17 = vld [vmem:[%s622_s7] sm:$0xff]  ;;  %v199_v18 = vld [vmem:[%s623_s5 + $0x10] sm:$0x3]  ;;  %v173_v31 = vxor.u32 %v172_v30, %v569_v29  ;;  %s258_s11 = sadd.s32 1013904242, %s626_s0 }
   0x7   :  { %v40_v20 = vld [vmem:[%s620_s1 + $0x10] sm:$0xff]  ;;  %v39_v21 = vld [vmem:[%s620_s1 + $0x8] sm:$0xff]  ;;  %v38_v23 = vld [vmem:[%s620_s1] sm:$0xff]  ;;  %v184_v47 = vshll.u32 %v416_v46, %v169_v40  ;;  %v183_v49 = vshll.u32 %v416_v46, %v168_v44  ;;  %s312_s13 = sadd.s32 3668340011, %s626_s0 }
   0x8   :  { %v54_v24 = vld [vmem:[%s625_s2] sm:$0xff]  ;;  %v55_v25 = vld [vmem:[%s625_s2 + $0x8] sm:$0xff]  ;;  %v56_v26 = vld [vmem:[%s625_s2 + $0x10] sm:$0x3]  ;;  %v174_v32 = vshrl.u32 %v173_v31, 16 }
   0x9   :  { %v327_v22 = vld [vmem:[#allocation4] sm:$0x1]  ;;  %v198_v48 = vld [vmem:[%s623_s5 + $0x8] sm:$0xff]  ;;  %s359_s17 = sadd.s32 2027808484, %s626_s0 }
   0xa   :  { %381 = vmatpush.xpose.msk.msra.mxu0 %vm75_vm0, %v51_v2  ;;  %v175_v33 = vxor.u32 %v174_v32, %v173_v31  ;;  %207 = vperm.xlu2 %414, %v198_v48   ;;  %v197_v57 = vld [vmem:[%s623_s5] sm:$0xff]  ;;  %v195_v2 = vld [vmem:[%s627_s4 + $0x8] sm:$0xff]  ;;  %v313_v32 = vstv %s312_s13  ;;  %v360_v48 = vstv %s359_s17 }
   0xb   :  { %v194_v1 = vld [vmem:[%s627_s4] sm:$0xff] }
   0xc   :  { %v176_v34 = vmul.u32 2246822507, %v175_v33  ;;  %v278_v31 = vld [vmem:[%s628_s6] sm:$0xff]  ;;  %v314_v33 = vxor.u32 %v313_v32, %v569_v29 }
   0xd   :  { %67 = vperm.xlu0 %412, %v58_v14   ;;  %212 = vperm.xlu1 %413, %v199_v18  }
   0xe   :  { %382 = vmatpush.xpose.msk.msra.mxu0 %vm75_vm0, %v50_v3  ;;  %v177_v35 = vshrl.u32 %v176_v34, 13  ;;  %v196_v3 = vld [vmem:[%s627_s4 + $0x10] sm:$0x3] }
  0x10   :  { %v178_v36 = vxor.u32 %v177_v35, %v176_v34  ;;  %v315_v34 = vshrl.u32 %v314_v33, 16 }
  0x12   :  { %383 = vmatpush.xpose.msk.msra.mxu0 %vm75_vm0, %v49_v4  ;;  %v179_v39 = vmul.u32 3266489909, %v178_v36  ;;  %202 = vperm.xlu2 %414, %v197_v57   ;;  %v259_v4 = vstv %s258_s11  ;;  %v316_v35 = vxor.u32 %v315_v34, %v314_v33 }
  0x14   :  { %v180_v41 = vshrl.u32 %v179_v39, 16  ;;  %v317_v36 = vmul.u32 2246822507, %v316_v35 }
  0x15   :  { %282 = vperm.xlu0 %412, %v279_v17   ;;  %330 = vperm.xlu1 %413, %v327_v22  }
  0x16   :  { %384 = vmatpush.xpose.msk.msra.mxu0 %vm75_vm0, %v48_v5  ;;  %v181_v45 = vxor.u32 %v180_v41, %v179_v39  ;;  %v260_v5 = vxor.u32 %v259_v4, %v569_v29 }
  0x18   :  { %v187_v50 = vand.u32 %v184_v47, %v181_v45  ;;  %v186_v56 = vand.u32 %v183_v49, %v181_v45  ;;  %v185_v60 = vand.u32 %v575_v51, %v181_v45 }
  0x1a   :  { %385 = vmatpush.xpose.msk.msra.mxu0 %vm75_vm0, %v47_v6  ;;  %vm190_vm1 = vcmp.ne.s32.totalorder %v187_v50, 0  ;;  %vm189_vm3 = vcmp.ne.s32.totalorder %v186_v56, 0  ;;  %vm188_vm4 = vcmp.ne.s32.totalorder %v185_v60, 0  ;;  %v261_v6 = vshrl.u32 %v260_v5, 16 }
  0x1e   :  { %386 = vmatpush.xpose.msk.msra.mxu0 %vm75_vm0, %v46_v7  ;;  %v262_v7 = vxor.u32 %v261_v6, %v260_v5 }
  0x22   :  { %387 = vmatpush.xpose.msk.msra.mxu0 %vm75_vm0, %v45_v8  ;;  %v263_v8 = vmul.u32 2246822507, %v262_v7 }
  0x24   :  { %v264_v9 = vshrl.u32 %v263_v8, 13 }
  0x26   :  { %388 = vmatpush.xpose.msk.msra.mxu0 %vm75_vm0, %v44_v11  ;;  %v265_v10 = vxor.u32 %v264_v9, %v263_v8 }
  0x2a   :  { %389 = vmatpush.xpose.msk.msra.mxu0 %vm75_vm0, %v43_v12  ;;  %v266_v12 = vmul.u32 3266489909, %v265_v10 }
  0x2c   :  { %v267_v13 = vshrl.u32 %v266_v12, 16 }
  0x2e   :  { %390 = vmatpush.xpose.msk.msra.mxu0 %vm75_vm0, %v42_v15 }
  0x32   :  { %391 = vmatpush.xpose.msk.msra.mxu0 %vm75_vm0, %v41_v16  ;;  %v268_v16 = vxor.u32 %v267_v13, %v266_v12 }
  0x34   :  { %v271_v17 = vand.u32 %v268_v16, %v184_v47  ;;  %v270_v22 = vand.u32 %v268_v16, %v183_v49  ;;  %v326_v47 = vld [vmem:[%s629_s8] sm:$0x1]  ;;  %v361_v49 = vxor.u32 %v360_v48, %v569_v29 }
  0x36   :  { %392 = vmatpush.xpose.msk.msra.mxu0 %vm75_vm0, %v40_v20  ;;  %vm274_vm6 = vcmp.ne.s32.totalorder %v271_v17, 0  ;;  %vm273_vm7 = vcmp.ne.s32.totalorder %v270_v22, 0  ;;  %v362_v50 = vshrl.u32 %v361_v49, 16 }
  0x3a   :  { %393 = vmatpush.xpose.msk.msra.mxu0 %vm75_vm0, %v39_v21 }
  0x3e   :  { %394 = vmatpush.xpose.msk.msra.mxu0 %vm75_vm0, %v38_v23 }
  0x41   :  { %395 = vmatmul.msk.f32.vlgmr.msra.gmra.mxu0 %vm75_vm0, %v54_v24 }
  0x49   :  { %396 = vmatmul.msk.f32.gmra.mxu0 %vm75_vm0, %v55_v25  ;;  %v269_v25 = vand.u32 %v268_v16, %v575_v51 }
  0x4b   :  { %vm272_vm8 = vcmp.ne.s32.totalorder %v269_v25, 0 }
  0x51   :  { %397 = vmatmul.msk.f32.gmra.mxu0 %vm75_vm0, %v56_v26 }
  0x64   :  { %v208_v14 = vpop.permute.xlu2 %207 }
  0x6c   :  { %v203_v20 = vpop.permute.xlu2 %202 }
  0x77   :  { %v73_v42 = vpop.permute.xlu0 %72  ;;  %v63_v53 = vpop.permute.xlu1 %62 }
  0x7f   :  { %v68_v54 = vpop.permute.xlu0 %67  ;;  %v213_v18 = vpop.permute.xlu1 %212 }
  0xbe   :  { %v150_v37 = vpop.f32.mrf.mxu0 }
  0xbf   :  { %v151_v61 = vadd.f32 %v150_v37, %v63_v53  ;;  %v318_v37 = vshrl.u32 %v317_v36, 13 }
  0xc1   :  { %v159_v0 = vmax.f32 %v151_v61, 0.0  ;;  %v319_v38 = vxor.u32 %v318_v37, %v317_v36 }
  0xc3   :  { %v320_v39 = vmul.u32 3266489909, %v319_v38 }
  0xc5   :  { %v321_v40 = vshrl.u32 %v320_v39, 16 }
  0xc6   :  { %v153_v43 = vpop.f32.mrf.mxu0 }
  0xc7   :  { %v154_v58 = vadd.f32 %v153_v43, %v68_v54  ;;  %v322_v41 = vxor.u32 %v321_v40, %v320_v39  ;;  %v283_v43 = vpop.permute.xlu0 %282 }
  0xc9   :  { %v160_v63 = vmax.f32 %v154_v58, 0.0  ;;  %v331_v58 = vpop.permute.xlu1 %330 }
  0xca   :  { %v333_v60 = vperm.slane %v331_v58, 0 }
  0xce   :  { %v156_v52 = vpop.f32.mrf.mxu0 }
  0xcf   :  { %v157_v55 = vadd.f32 %v156_v52, %v73_v42  ;;  %v323_v42 = vand.u32 %v322_v41, %v575_v51  ;;  %v363_v52 = vxor.u32 %v362_v50, %v361_v49 }
  0xd1   :  { %v161_v59 = vmax.f32 %v157_v55, 0.0  ;;  %vm324_vm9 = vcmp.ne.s32.totalorder %v323_v42, 0  ;;  %v364_v53 = vmul.u32 2246822507, %v363_v52 }
  0xd3   :  { %v193_v62 = vsel %vm190_vm1, %v161_v59, 0.0  ;;  %v365_v54 = vshrl.u32 %v364_v53, 13 }
  0xd4   :  { %398 = vmatpush.msk.msra.mxu1 %vm225_vm2, %v193_v62 }
  0xd5   :  { %v366_v55 = vxor.u32 %v365_v54, %v364_v53 }
  0xd6   :  { %399 = vmatpush.msk.msra.mxu1 %vm189_vm3, %v160_v63 }
  0xd7   :  { %v367_v56 = vmul.u32 3266489909, %v366_v55 }
  0xd8   :  { %400 = vmatpush.msk.msra.mxu1 %vm188_vm4, %v159_v0 }
  0xd9   :  { %401 = vmatmul.msk.f32.vlgmr.msra.gmra.mxu1 %vm215_vm5, %v194_v1  ;;  %v368_v57 = vshrl.u32 %v367_v56, 16 }
  0xdb   :  { %v369_v59 = vxor.u32 %v368_v57, %v367_v56 }
  0xdd   :  { %v370_v62 = vand.u32 %v369_v59, %v575_v51 }
  0xdf   :  { %vm371_vm11 = vcmp.ne.s32.totalorder %v370_v62, 0 }
  0xe1   :  { %402 = vmatmul.msk.f32.gmra.mxu1 %vm215_vm5, %v195_v2 }
  0xe9   :  { %403 = vmatmul.msk.f32.gmra.mxu1 %vm215_vm5, %v196_v3 }
 0x156   :  { %v246_v11 = vpop.f32.mrf.mxu1 }
 0x157   :  { %v247_v26 = vadd.f32 %v246_v11, %v203_v20 }
 0x159   :  { %v255_v30 = vmax.f32 %v247_v26, 0.0 }
 0x15e   :  { %v249_v15 = vpop.f32.mrf.mxu1 }
 0x15f   :  { %v250_v23 = vadd.f32 %v249_v15, %v208_v14 }
 0x161   :  { %v256_v28 = vmax.f32 %v250_v23, 0.0 }
 0x166   :  { %v252_v19 = vpop.f32.mrf.mxu1 }
 0x167   :  { %v253_v21 = vadd.f32 %v252_v19, %v213_v18 }
 0x169   :  { %v257_v24 = vmax.f32 %v253_v21, 0.0 }
 0x16b   :  { %v277_v27 = vsel %vm274_vm6, %v257_v24, 0.0 }
 0x16c   :  { %404 = vmatpush.msk.msra.mxu2 %vm225_vm2, %v277_v27 }
 0x16e   :  { %405 = vmatpush.msk.msra.mxu2 %vm273_vm7, %v256_v28 }
 0x170   :  { %406 = vmatpush.msk.msra.mxu2 %vm272_vm8, %v255_v30 }
 0x171   :  { %407 = vmatmul.msk.f32.vlgmr.msra.gmra.mxu2 %vm215_vm5, %v278_v31 }
 0x1f4   :  { %v308_v44 = vpop.f32.mrf.mxu2 }
 0x1f5   :  { %v309_v45 = vadd.f32 %v308_v44, %v283_v43 }
 0x1f7   :  { %v311_v46 = vmax.f32 %v309_v45, 0.0 }
 0x1f9   :  { %408 = vmatpush.msk.msra.mxu3 %vm324_vm9, %v311_v46 }
 0x1fa   :  { %409 = vmatmul.msk.f32.vlgmr.msra.gmra.mxu3 %vm334_vm10, %v326_v47 }
 0x27d   :  { %v355_v61 = vpop.f32.mrf.mxu3 }
 0x27e   :  { %v356_v63 = vadd.f32 %v355_v61, %v333_v60 }
 0x280   :  { %v358_v0 = vmax.f32 %v356_v63, 0.0 }
 0x282   :  { %v372_v1 = vmul.f32 2.0, %v358_v0 }
 0x284   :  { %v373_v2 = vsel %vm371_vm11, %v372_v1, 0.0 }
 0x285   :  { %374 = vst [vmem:[%s630_s10] sm:$0x1] %v373_v2 }

</bundles_post_ra>
